<compile_context>
chip_gen: v6e
topology: v6e:2x2x1
jax: 0.10.0
libtpu: 0.0.40
codegen_flags: <defaults>
</compile_context>

<pallas_src>
import functools

import jax
import jax.numpy as jnp
import numpy as np
from jax.experimental import pallas as pl
from jax.experimental.pallas import tpu as pltpu


# --------------------------------- kernel -------------------------------------------

def block_kernel(x_ref, w1_ref, b1_ref, w2_ref, b2_ref, out_ref, *,
                 seq_len, seqs_per_tile):
    # x_ref  : (TM, C)  activations, TM = seqs_per_tile * seq_len rows (channels-last)
    # w1_ref : (3C, C)  conv1 weight, tap-major, BN1 scale pre-folded
    # w2_ref : (3C, C)  conv2 weight, tap-major, BN2 scale pre-folded
    # b1/b2  : (1, C)   folded BatchNorm biases (f32)
    # out_ref: (TM, C)
    TM = x_ref.shape[0]
    L = seq_len

    # f32 copy of the tile: residual path + tap construction stay in f32.
    xf = x_ref[...].astype(jnp.float32)

    # Sequence-boundary masks: conv padding=1 means the left/right taps read zeros at
    # the first/last row of every sequence.  Built from a 2-D iota + compares; this
    # also kills the wrap-around row brought in by pltpu.roll.
    row = jax.lax.broadcasted_iota(jnp.int32, (TM, 1), 0)
    is_first = row == 0
    is_last = row == (L - 1)
    for s in range(1, seqs_per_tile):
        is_first = jnp.logical_or(is_first, row == s * L)
        is_last = jnp.logical_or(is_last, row == s * L + L - 1)

    def taps(a):
        # (TM, C) f32 -> (TM, 3C) f32 = [a[l-1] | a[l] | a[l+1]], zero at sequence
        # edges.  Rolls run on the XLU; everything stays register-resident (no
        # padded VMEM scratch round-trip).
        left = jnp.where(is_first, 0.0, pltpu.roll(a, shift=1, axis=0))
        right = jnp.where(is_last, 0.0, pltpu.roll(a, shift=TM - 1, axis=0))
        return jnp.concatenate([left, a, right], axis=-1)

    mxu_dtype = w1_ref.dtype   # f32 or bf16; accumulation is always f32

    # conv1 (k=3, stride=1, pad=1, BN1 scale folded into weight) + bias + ReLU
    h = jnp.dot(taps(xf).astype(mxu_dtype), w1_ref[...],
                preferred_element_type=jnp.float32)
    h = jnp.maximum(h + b1_ref[0], 0.0)

    # conv2 (BN2 scale folded) + bias + residual (already in VMEM) + ReLU
    y = jnp.dot(taps(h).astype(mxu_dtype), w2_ref[...],
                preferred_element_type=jnp.float32)
    out_ref[...] = jnp.maximum(y + b2_ref[0] + xf, 0.0).astype(out_ref.dtype)


# --------------------------------- wrapper ------------------------------------------

def _seqs_per_tile(batch, seq_len, itemsize, target_rows):
    """Whole sequences per grid step: large enough to fill the MXU M dim and amortize
    per-step overhead, small enough for VMEM, and >=2 grid steps when the batch allows
    (v7x has 2 TensorCores).  The tile's sublane dim stays aligned unless it covers
    the full array (which is always legal)."""
    align = 16 if itemsize == 2 else 8
    best = batch
    for nb in range(batch, 0, -1):
        if batch % nb:
            continue
        if nb != batch and (nb * seq_len) % align:
            continue
        best = nb
        if nb * seq_len <= target_rows and (batch // nb >= 2 or nb == 1):
            break
    return best


def block_forward(x_ncl, w1, s1, b1, w2, s2, b2, *,
                  compute_dtype=jnp.float32, target_rows=512):
    """Fused Block forward.  x_ncl: (N, C, L) float32, PyTorch NCL layout.
    Returns (N, C, L) in compute_dtype."""
    N, C, L = x_ncl.shape
    M = N * L

    # Channels-last, batch collapsed into the matmul M dimension.  (In a full network
    # this layout conversion would happen once at the network input, not per block.)
    x2d = jnp.transpose(x_ncl, (0, 2, 1)).reshape(M, C).astype(compute_dtype)

    def fold(w, s):
        # (Cout, Cin, K) conv weight * per-output-channel BN scale
        #   -> tap-major (K*Cin, Cout) matmul weight matching taps() lane order.
        wk = jnp.transpose(w * s[:, None, None], (2, 1, 0))    # (K, Cin, Cout)
        return wk.reshape(3 * C, C).astype(compute_dtype)

    w1s, w2s = fold(w1, s1), fold(w2, s2)
    b1v = b1.reshape(1, C).astype(jnp.float32)
    b2v = b2.reshape(1, C).astype(jnp.float32)

    nb = _seqs_per_tile(N, L, jnp.dtype(compute_dtype).itemsize, target_rows)
    TM = nb * L
    grid = (N // nb,)

    kernel = functools.partial(block_kernel, seq_len=L, seqs_per_tile=nb)
    out2d = pl.pallas_call(
        kernel,
        out_shape=jax.ShapeDtypeStruct((M, C), compute_dtype),
        grid_spec=pltpu.PrefetchScalarGridSpec(
            num_scalar_prefetch=0,
            grid=grid,
            in_specs=[
                pl.BlockSpec((TM, C), lambda i: (i, 0)),       # activations
                pl.BlockSpec((3 * C, C), lambda i: (0, 0)),    # conv1 (* bn1 scale)
                pl.BlockSpec((1, C), lambda i: (0, 0)),        # bn1 bias
                pl.BlockSpec((3 * C, C), lambda i: (0, 0)),    # conv2 (* bn2 scale)
                pl.BlockSpec((1, C), lambda i: (0, 0)),        # bn2 bias
            ],
            out_specs=pl.BlockSpec((TM, C), lambda i: (i, 0)),
        ),
        compiler_params=pltpu.CompilerParams(dimension_semantics=("parallel",)),
    )(x2d, w1s, b1v, w2s, b2v)

    return jnp.transpose(out2d.reshape(N, L, C), (0, 2, 1))


# ----------------------- deterministic parameter construction -----------------------

def quaternion_conv_weight(key, in_channels, out_channels, kernel_size):
    """Hamilton-product structured Conv1d weight, shape (C_out, C_in, K)."""
    ci, co = in_channels // 4, out_channels // 4
    kr, ki, kj, kk = jax.random.split(key, 4)
    scale = 1.0 / np.sqrt(in_channels * kernel_size)
    r = jax.random.normal(kr, (co, ci, kernel_size), jnp.float32) * scale
    i = jax.random.normal(ki, (co, ci, kernel_size), jnp.float32) * scale
    j = jax.random.normal(kj, (co, ci, kernel_size), jnp.float32) * scale
    k = jax.random.normal(kk, (co, ci, kernel_size), jnp.float32) * scale
    row_r = jnp.concatenate([r, -i, -j, -k], axis=1)
    row_i = jnp.concatenate([i,  r, -k,  j], axis=1)
    row_j = jnp.concatenate([j,  k,  r, -i], axis=1)
    row_k = jnp.concatenate([k, -j,  i,  r], axis=1)
    return jnp.concatenate([row_r, row_i, row_j, row_k], axis=0)


def folded_batchnorm(key, channels, eps=1e-5):
    """Eval-mode BatchNorm1d folded to per-channel (scale, bias)."""
    kg, kb, km, kv = jax.random.split(key, 4)
    gamma = 1.0 + 0.1 * jax.random.normal(kg, (channels,), jnp.float32)
    beta = 0.1 * jax.random.normal(kb, (channels,), jnp.float32)
    mean = 0.1 * jax.random.normal(km, (channels,), jnp.float32)
    var = jnp.abs(1.0 + 0.1 * jax.random.normal(kv, (channels,), jnp.float32))
    scale = gamma / jnp.sqrt(var + eps)
    bias = beta - mean * scale
    return scale, bias


# ----------------------------- pure-JAX reference -----------------------------------

def ref_forward(x_ncl, w1, s1, b1, w2, s2, b2):
    def conv1d(x, w):
        return jax.lax.conv_general_dilated(
            x, w, window_strides=(1,), padding=((1, 1),),
            dimension_numbers=("NCH", "OIH", "NCH"))
    h = conv1d(x_ncl, w1)
    h = jnp.maximum(h * s1[None, :, None] + b1[None, :, None], 0.0)
    y = conv1d(h, w2)
    y = y * s2[None, :, None] + b2[None, :, None] + x_ncl
    return jnp.maximum(y, 0.0)


if __name__ == "__main__":
    N, C, L = 2, 32, 16       # batch, channels (multiple of 4 for quaternion), length
    key = jax.random.PRNGKey(0)
    kx, kw1, kw2, kbn1, kbn2 = jax.random.split(key, 5)

    x = jax.random.normal(kx, (N, C, L), jnp.float32)           # PyTorch NCL input
    w1 = quaternion_conv_weight(kw1, C, C, 3)
    w2 = quaternion_conv_weight(kw2, C, C, 3)
    s1, b1 = folded_batchnorm(kbn1, C)
    s2, b2 = folded_batchnorm(kbn2, C)

    ref = jax.block_until_ready(ref_forward(x, w1, s1, b1, w2, s2, b2))

    # f32 path: exact semantics of the (eval-mode) PyTorch module.
    out_f32 = jax.block_until_ready(block_forward(x, w1, s1, b1, w2, s2, b2))
    np.testing.assert_allclose(np.asarray(out_f32), np.asarray(ref),
                               rtol=1e-2, atol=1e-2)

    # bf16 activations/weights with f32 MXU accumulation: halves HBM traffic in the
    # memory-bound regime; element-wise epilogue stays f32.
    out_bf16 = jax.block_until_ready(
        block_forward(x, w1, s1, b1, w2, s2, b2, compute_dtype=jnp.bfloat16))
    np.testing.assert_allclose(np.asarray(out_bf16.astype(jnp.float32)),
                               np.asarray(ref), rtol=3e-2, atol=3e-2)

    print("KERNEL_OK")
</pallas_src>

<mosaic_0001>
module attributes {stable_mosaic.version = 11 : i64} {
  func.func @block_kernel(%arg0: i32, %arg1: memref<16x32xf32, #tpu.memory_space<vmem>>, %arg2: memref<96x32xf32, #tpu.memory_space<vmem>>, %arg3: memref<1x32xf32, #tpu.memory_space<vmem>>, %arg4: memref<96x32xf32, #tpu.memory_space<vmem>>, %arg5: memref<1x32xf32, #tpu.memory_space<vmem>>, %arg6: memref<16x32xf32, #tpu.memory_space<vmem>>) attributes {dimension_semantics = [#tpu.dimension_semantics<parallel>], iteration_bounds = array<i64: 2>, scalar_prefetch = 0 : i64, scratch_operands = 0 : i64, tpu.core_type = #tpu.core_type<tc>, window_params = [{transform_indices = @transform_0, window_bounds = array<i64: 16, 32>}, {pipeline_mode = #tpu.pipeline_mode<synchronous>, transform_indices = @transform_1, window_bounds = array<i64: 96, 32>}, {pipeline_mode = #tpu.pipeline_mode<synchronous>, transform_indices = @transform_2, window_bounds = array<i64: 1, 32>}, {pipeline_mode = #tpu.pipeline_mode<synchronous>, transform_indices = @transform_3, window_bounds = array<i64: 96, 32>}, {pipeline_mode = #tpu.pipeline_mode<synchronous>, transform_indices = @transform_4, window_bounds = array<i64: 1, 32>}, {transform_indices = @transform_5, window_bounds = array<i64: 16, 32>}]} {
    %c0 = arith.constant 0 : index
    %c0_0 = arith.constant 0 : index
    %0 = vector.load %arg1[%c0, %c0_0] : memref<16x32xf32, #tpu.memory_space<vmem>>, vector<16x32xf32>
    %1 = tpu.iota {dimensions = array<i32: 0>} : vector<16x1xi32>
    %c0_i32 = arith.constant 0 : i32
    %2 = vector.broadcast %c0_i32 : i32 to vector<16x1xi32>
    %3 = arith.cmpi eq, %1, %2 : vector<16x1xi32>
    %c15_i32 = arith.constant 15 : i32
    %4 = vector.broadcast %c15_i32 : i32 to vector<16x1xi32>
    %5 = arith.cmpi eq, %1, %4 : vector<16x1xi32>
    %c1_i32 = arith.constant 1 : i32
    %6 = tpu.dynamic_rotate %0 by %c1_i32 dim 0 : vector<16x32xf32>, i32 -> vector<16x32xf32>
    %cst = arith.constant 0.000000e+00 : f32
    %7 = vector.shape_cast %3 : vector<16x1xi1> to vector<16x1xi1>
    %8 = vector.broadcast %7 : vector<16x1xi1> to vector<16x32xi1>
    %9 = vector.broadcast %cst : f32 to vector<16x32xf32>
    %10 = arith.select %8, %9, %6 : vector<16x32xi1>, vector<16x32xf32>
    %c15_i32_1 = arith.constant 15 : i32
    %11 = tpu.dynamic_rotate %0 by %c15_i32_1 dim 0 : vector<16x32xf32>, i32 -> vector<16x32xf32>
    %cst_2 = arith.constant 0.000000e+00 : f32
    %12 = vector.shape_cast %5 : vector<16x1xi1> to vector<16x1xi1>
    %13 = vector.broadcast %12 : vector<16x1xi1> to vector<16x32xi1>
    %14 = vector.broadcast %cst_2 : f32 to vector<16x32xf32>
    %15 = arith.select %13, %14, %11 : vector<16x32xi1>, vector<16x32xf32>
    %16 = tpu.concatenate %10, %0, %15 in 1 : vector<16x32xf32>, vector<16x32xf32>, vector<16x32xf32> -> vector<16x96xf32>
    %c0_3 = arith.constant 0 : index
    %c0_4 = arith.constant 0 : index
    %17 = vector.load %arg2[%c0_3, %c0_4] : memref<96x32xf32, #tpu.memory_space<vmem>>, vector<96x32xf32>
    %cst_5 = arith.constant dense<0.000000e+00> : vector<16x32xf32>
    %18 = tpu.matmul %16, %17, %cst_5 {dimension_numbers = #tpu.dot_dimension_numbers<[1], [0], [0], [1], [0, 0, 1, 1], [], []>} : vector<16x96xf32>, vector<96x32xf32>, vector<16x32xf32> -> vector<16x32xf32>
    %c0_6 = arith.constant 0 : index
    %c0_7 = arith.constant 0 : index
    %19 = vector.load %arg3[%c0_6, %c0_7] : memref<1x32xf32, #tpu.memory_space<vmem>>, vector<1x32xf32>
    %20 = vector.shape_cast %19 : vector<1x32xf32> to vector<32xf32>
    %21 = vector.shape_cast %20 : vector<32xf32> to vector<1x32xf32>
    %22 = vector.broadcast %21 : vector<1x32xf32> to vector<16x32xf32>
    %23 = arith.addf %18, %22 : vector<16x32xf32>
    %cst_8 = arith.constant 0.000000e+00 : f32
    %24 = vector.broadcast %cst_8 : f32 to vector<16x32xf32>
    %25 = arith.maximumf %23, %24 : vector<16x32xf32>
    %c1_i32_9 = arith.constant 1 : i32
    %26 = tpu.dynamic_rotate %25 by %c1_i32_9 dim 0 : vector<16x32xf32>, i32 -> vector<16x32xf32>
    %cst_10 = arith.constant 0.000000e+00 : f32
    %27 = vector.shape_cast %3 : vector<16x1xi1> to vector<16x1xi1>
    %28 = vector.broadcast %27 : vector<16x1xi1> to vector<16x32xi1>
    %29 = vector.broadcast %cst_10 : f32 to vector<16x32xf32>
    %30 = arith.select %28, %29, %26 : vector<16x32xi1>, vector<16x32xf32>
    %c15_i32_11 = arith.constant 15 : i32
    %31 = tpu.dynamic_rotate %25 by %c15_i32_11 dim 0 : vector<16x32xf32>, i32 -> vector<16x32xf32>
    %cst_12 = arith.constant 0.000000e+00 : f32
    %32 = vector.shape_cast %5 : vector<16x1xi1> to vector<16x1xi1>
    %33 = vector.broadcast %32 : vector<16x1xi1> to vector<16x32xi1>
    %34 = vector.broadcast %cst_12 : f32 to vector<16x32xf32>
    %35 = arith.select %33, %34, %31 : vector<16x32xi1>, vector<16x32xf32>
    %36 = tpu.concatenate %30, %25, %35 in 1 : vector<16x32xf32>, vector<16x32xf32>, vector<16x32xf32> -> vector<16x96xf32>
    %c0_13 = arith.constant 0 : index
    %c0_14 = arith.constant 0 : index
    %37 = vector.load %arg4[%c0_13, %c0_14] : memref<96x32xf32, #tpu.memory_space<vmem>>, vector<96x32xf32>
    %cst_15 = arith.constant dense<0.000000e+00> : vector<16x32xf32>
    %38 = tpu.matmul %36, %37, %cst_15 {dimension_numbers = #tpu.dot_dimension_numbers<[1], [0], [0], [1], [0, 0, 1, 1], [], []>} : vector<16x96xf32>, vector<96x32xf32>, vector<16x32xf32> -> vector<16x32xf32>
    %c0_16 = arith.constant 0 : index
    %c0_17 = arith.constant 0 : index
    %39 = vector.load %arg5[%c0_16, %c0_17] : memref<1x32xf32, #tpu.memory_space<vmem>>, vector<1x32xf32>
    %40 = vector.shape_cast %39 : vector<1x32xf32> to vector<32xf32>
    %41 = vector.shape_cast %40 : vector<32xf32> to vector<1x32xf32>
    %42 = vector.broadcast %41 : vector<1x32xf32> to vector<16x32xf32>
    %43 = arith.addf %38, %42 : vector<16x32xf32>
    %44 = arith.addf %43, %0 : vector<16x32xf32>
    %cst_18 = arith.constant 0.000000e+00 : f32
    %45 = vector.broadcast %cst_18 : f32 to vector<16x32xf32>
    %46 = arith.maximumf %44, %45 : vector<16x32xf32>
    %c0_19 = arith.constant 0 : index
    %c0_20 = arith.constant 0 : index
    %47 = vector.load %arg6[%c0_19, %c0_20] : memref<16x32xf32, #tpu.memory_space<vmem>>, vector<16x32xf32>
    tpu.vector_store %arg6[%c0_19, %c0_20], %46 {strides = array<i32>} : memref<16x32xf32, #tpu.memory_space<vmem>>, vector<16x32xf32>,
    return
  }
  func.func @transform_0(%arg0: i32) -> (i32, i32) {
    %c0_i32 = arith.constant 0 : i32
    %c0_i32_0 = arith.constant 0 : i32
    return %arg0, %c0_i32 : i32, i32
  }
  func.func @transform_1(%arg0: i32) -> (i32, i32) {
    %c0_i32 = arith.constant 0 : i32
    %c0_i32_0 = arith.constant 0 : i32
    %c0_i32_1 = arith.constant 0 : i32
    return %c0_i32, %c0_i32_0 : i32, i32
  }
  func.func @transform_2(%arg0: i32) -> (i32, i32) {
    %c0_i32 = arith.constant 0 : i32
    %c0_i32_0 = arith.constant 0 : i32
    %c0_i32_1 = arith.constant 0 : i32
    return %c0_i32, %c0_i32_0 : i32, i32
  }
  func.func @transform_3(%arg0: i32) -> (i32, i32) {
    %c0_i32 = arith.constant 0 : i32
    %c0_i32_0 = arith.constant 0 : i32
    %c0_i32_1 = arith.constant 0 : i32
    return %c0_i32, %c0_i32_0 : i32, i32
  }
  func.func @transform_4(%arg0: i32) -> (i32, i32) {
    %c0_i32 = arith.constant 0 : i32
    %c0_i32_0 = arith.constant 0 : i32
    %c0_i32_1 = arith.constant 0 : i32
    return %c0_i32, %c0_i32_0 : i32, i32
  }
  func.func @transform_5(%arg0: i32) -> (i32, i32) {
    %c0_i32 = arith.constant 0 : i32
    %c0_i32_0 = arith.constant 0 : i32
    return %arg0, %c0_i32 : i32, i32
  }
}

</mosaic_0001>

<bundles_post_ra>
// kernel: tpu_custom_call.1
= control target key start
LH: loop header
LB: loop body
LE: loop exit
PB: predicated region body
PF: predicated region fallthrough
CT: control target
= control target key end

     0   :  { %10 = vsyncpa [#allocation3], 0  ;;  %s1083_s0 = inlined_call_operand.vmem [shape: f32[32,32], index: 0, kind: input, shape index: {}]   ;;  %s1084_s1 = inlined_call_operand.vmem [shape: f32[96,32], index: 1, kind: input, shape index: {}]   ;;  %s1085_s2 = inlined_call_operand.vmem [shape: f32[1,32], index: 2, kind: input, shape index: {}]   ;;  %s1086_s3 = inlined_call_operand.vmem [shape: f32[96,32], index: 3, kind: input, shape index: {}]   ;;  %s1087_s4 = inlined_call_operand.vmem [shape: f32[1,32], index: 4, kind: input, shape index: {}]   ;;  %s1088_s5 = inlined_call_operand.hbm [shape: f32[32,32], index: 5, kind: output, shape index: {}]  }
   0x1   :  { %12 = vsyncpa [#allocation3 + $0x1], 0  ;;  %s837_s18 = smov 0   ;;  %s839_s19 = smov 0  }
   0x2   :  { %s841_s20 = smov 0   ;;  %s843_s21 = smov 0  }
   0x3 LB: > { %s858_s22 = sadd.s32 4294967295, %s800_s21   ;;  %s596_s23 = sadd.s32 4294967294, %s800_s21   ;;  %s800_s21 = sphi %s843_s21, %s1094_s21   ;;  %s796_s20 = sphi %s841_s20, %s1093_s20   ;;  %s792_s19 = sphi %s839_s19, %s1092_s19   ;;  %s788_s18 = sphi %s837_s18, %s1091_s18  }
   0x4   : > { %s862_s24 = sadd.s32 1, %s800_s21   ;;  %s135_s25 = sadd.s32 1, %s796_s20 }
   0x5   : > { %s132_s26 = ssub.s32 %s800_s21, %s862_s24  ;;  %p145_p0 = scmp.ne.s32.totalorder %s796_s20, %s792_s19 }
   0x6   : > { %p133_p1 = scmp.eq.s32.totalorder %s132_s26, 0  ;;  %p146_p2 = scmp.eq.s32.totalorder %s858_s22, 1 }
   0x7   : > { %p151_p3 = scmp.ne.s32.totalorder %s792_s19, %s788_s18  ;;  %p152_p4 = scmp.eq.s32.totalorder %s596_s23, 1 }
   0x8   : > { %s873_s27 = scalar_select %p133_p1, %s796_s20, %s135_s25  }
   0x9   : > { %p875_p5 = por %p146_p2, %p145_p0  ;;  %p879_p6 = por %p152_p4, %p151_p3 }
   0xa   : > { %p599_p7 = scmp.ge.s32.totalorder %s800_s21, 1  ;;  %p191_p8 = scmp.lt.s32.totalorder %s800_s21, 3 }
   0xc   : > { %p192_p9 = pnand %p599_p7, %p191_p8 }
   0xd   : > { %s601_s30 = sshll.u32 (!%p192_p9), %s858_s22, 1  ;;  %s802_s26 = smov (!%p192_p9), 32  }
   0xe   : > { %195 = sbr.rel (%p192_p9) target bundleno = 681 (0x2a9), region = 40  ;;  %p220_p10 = scmp.lt.s32.totalorder (!%p192_p9), %s601_s30, 3 }
   0xf   : > { %s803_s9 = smov (!%p192_p9), 64   ;;  %s804_s13 = smov (!%p192_p9), [#allocation2]  }
  0x13   : > { %v228_v0 = vlaneseq  ;;  %v290_v1 = vld [vmem:[%s1084_s1 + $0x58] sm:$0xff]  ;;  %v289_v2 = vld [vmem:[%s1084_s1 + $0x50] sm:$0xff]  ;;  %v288_v3 = vld [vmem:[%s1084_s1 + $0x48] sm:$0xff]  ;;  %s1096_s30 = smov (!%p220_p10, %s601_s30), 3  ;;  %vm273_vm4 = vcmask 261120   ;;  %vm276_vm5 = vcmask 523264  }
  0x14   : > { %643 = vmatprep.subr.mxu0 %v290_v1  ;;  %v287_v5 = vld [vmem:[%s1084_s1 + $0x40] sm:$0xff]  ;;  %s602_s14 = sshll.u32 %s1096_s30, 3  ;;  %v286_v7 = vld [vmem:[%s1084_s1 + $0x38] sm:$0xff]  ;;  %v285_v12 = vld [vmem:[%s1084_s1 + $0x30] sm:$0xff]  ;;  %vm298_vm6 = vcmask 785408   ;;  %s614_s30 = sshll.u32 %s858_s22, 8 }
  0x15   : > { %644 = vmatpush3.msra.mxu0 %v290_v1  ;;  %v895_v4 = vshrl.u32 %v228_v0, 7  ;;  %s223_s17 = scalar_lea.vmem %s1083_s0, %s602_s14  ;;  %v284_v15 = vld [vmem:[%s1084_s1 + $0x28] sm:$0xff]  ;;  %v283_v17 = vld [vmem:[%s1084_s1 + $0x20] sm:$0xff]  ;;  %v282_v18 = vld [vmem:[%s1084_s1 + $0x18] sm:$0xff]  ;;  %s1037_s11 = scalar_lea.hbm %s1088_s5, %s614_s30 }
  0x16   : > { %645 = vmatprep.subr.mxu0 %v289_v2  ;;  %v909_v8 = vld [vmem:[%s223_s17] sm:$0xff]  ;;  %v911_v9 = vld [vmem:[%s223_s17 + $0x8] sm:$0xff]  ;;  %v281_v19 = vld [vmem:[%s1084_s1 + $0x10] sm:$0xff]  ;;  %s744_s14 = sshll.u32 %s804_s13, 4  ;;  %s745_s14 = int_to_ptr.vmem [resolvable:$false] %s744_s14 }
  0x17   : > { %646 = vmatpush3.msra.mxu0 %v289_v2  ;;  %v901_v6 = vadd.s32 8, %v895_v4  ;;  %vm248_vm0 = vcmp.lt.s32.totalorder %v895_v4, 7  ;;  %259 = vrot.lane.b32.xlu0 %v909_v8, %s802_s26  ;;  %v246_v10 = vrot.slane %v909_v8, 1  ;;  %v247_v11 = vrot.slane %v911_v9, 1  ;;  %v280_v20 = vld [vmem:[%s1084_s1 + $0x8] sm:$0xff]  ;;  %v279_v21 = vld [vmem:[%s1084_s1] sm:$0xff] }
  0x18   : > { %647 = vmatprep.subr.mxu0 %v288_v3  ;;  %v235_v22 = vrot.slane %v909_v8, 7  ;;  %v236_v23 = vrot.slane %v911_v9, 7  ;;  %vm237_vm2 = vcmp.lt.s32.totalorder %v895_v4, 1  ;;  %vm231_vm3 = vcmp.eq.s32.totalorder %v895_v4, 0  ;;  %v425_v35 = vld [vmem:[%s1086_s3 + $0x58] sm:$0xff]  ;;  %v424_v36 = vld [vmem:[%s1086_s3 + $0x50] sm:$0xff] }
  0x19   : > { %648 = vmatpush3.msra.mxu0 %v288_v3  ;;  %vm234_vm1 = vcmp.eq.s32.totalorder %v901_v6, 15  ;;  %v249_v13 = vsel %vm248_vm0, %v246_v10, %v247_v11  ;;  %v250_v14 = vsel %vm248_vm0, %v247_v11, %v246_v10  ;;  %670 = vmatprep.subr.mxu1 %v425_v35  ;;  %v423_v37 = vld [vmem:[%s1086_s3 + $0x48] sm:$0xff]  ;;  %v422_v38 = vld [vmem:[%s1086_s3 + $0x40] sm:$0xff]  ;;  %v421_v39 = vld [vmem:[%s1086_s3 + $0x38] sm:$0xff]  ;;  %s746_s15 = scalar_lea.vmem %s745_s14, 512 }
  0x1a   : > { %649 = vmatprep.subr.mxu0 %v287_v5  ;;  %267 = vrot.lane.b32.xlu1 %v249_v13, %s803_s9  ;;  %v256_v16 = vsel %vm234_vm1, 0.0, %v250_v14  ;;  %v239_v24 = vsel %vm237_vm2, %v236_v23, %v235_v22  ;;  %v238_v28 = vsel %vm237_vm2, %v235_v22, %v236_v23  ;;  %v420_v40 = vld [vmem:[%s1086_s3 + $0x30] sm:$0xff]  ;;  %v419_v41 = vld [vmem:[%s1086_s3 + $0x28] sm:$0xff]  ;;  %v418_v42 = vld [vmem:[%s1086_s3 + $0x20] sm:$0xff] }
  0x1b   : > { %650 = vmatpush3.msra.mxu0 %v287_v5  ;;  %261 = vrot.lane.b32.xlu0 %v911_v9, %s802_s26  ;;  %v244_v25 = vsel %vm231_vm3, 0.0, %v239_v24  ;;  %v417_v43 = vld [vmem:[%s1086_s3 + $0x18] sm:$0xff]  ;;  %v416_v44 = vld [vmem:[%s1086_s3 + $0x10] sm:$0xff]  ;;  %v415_v45 = vld [vmem:[%s1086_s3 + $0x8] sm:$0xff] }
  0x1c   : > { %651 = vmatprep.subr.mxu0 %v286_v7  ;;  %671 = vmatpush3.msra.mxu1 %v425_v35  ;;  %v414_v46 = vld [vmem:[%s1086_s3] sm:$0xff] }
  0x1d   : > { %652 = vmatpush3.msra.mxu0 %v286_v7  ;;  %672 = vmatprep.subr.mxu1 %v424_v36  ;;  %v603_v47 = vld [vmem:[%s1085_s2] ss:$0 sm:$0xff] }
  0x1e   : > { %653 = vmatprep.subr.mxu0 %v285_v12  ;;  %269 = vrot.lane.b32.xlu1 %v256_v16, %s803_s9  ;;  %v606_v4 = vld [vmem:[%s1087_s4] ss:$0 sm:$0xff] }
  0x1f   : > { %654 = vmatpush3.msra.mxu0 %v285_v12  ;;  %673 = vmatpush3.msra.mxu1 %v424_v36 }
  0x20   : > { %655 = vmatprep.subr.mxu0 %v284_v15  ;;  %674 = vmatprep.subr.mxu1 %v423_v37 }
  0x21   : > { %656 = vmatpush3.msra.mxu0 %v284_v15  ;;  %675 = vmatpush3.msra.mxu1 %v423_v37 }
  0x22   : > { %657 = vmatprep.subr.mxu0 %v283_v17  ;;  %676 = vmatprep.subr.mxu1 %v422_v38 }
  0x23   : > { %658 = vmatpush3.msra.mxu0 %v283_v17  ;;  %677 = vmatpush3.msra.mxu1 %v422_v38 }
  0x24   : > { %659 = vmatprep.subr.mxu0 %v282_v18  ;;  %678 = vmatprep.subr.mxu1 %v421_v39 }
  0x25   : > { %660 = vmatpush3.msra.mxu0 %v282_v18  ;;  %679 = vmatpush3.msra.mxu1 %v421_v39 }
  0x26   : > { %661 = vmatprep.subr.mxu0 %v281_v19  ;;  %680 = vmatprep.subr.mxu1 %v420_v40 }
  0x27   : > { %662 = vmatpush3.msra.mxu0 %v281_v19  ;;  %681 = vmatpush3.msra.mxu1 %v420_v40 }
  0x28   : > { %663 = vmatprep.subr.mxu0 %v280_v20  ;;  %682 = vmatprep.subr.mxu1 %v419_v41 }
  0x29   : > { %664 = vmatpush3.msra.mxu0 %v280_v20  ;;  %683 = vmatpush3.msra.mxu1 %v419_v41 }
  0x2a   : > { %665 = vmatprep.subr.mxu0 %v279_v21  ;;  %684 = vmatprep.subr.mxu1 %v418_v42 }
  0x2b   : > { %666 = vmatpush3.msra.mxu0 %v279_v21  ;;  %685 = vmatpush3.msra.mxu1 %v418_v42 }
  0x2c   : > { %686 = vmatprep.subr.mxu1 %v417_v43 }
  0x2d   : > { %687 = vmatpush3.msra.mxu1 %v417_v43 }
  0x2e   : > { %688 = vmatprep.subr.mxu1 %v416_v44 }
  0x2f   : > { %689 = vmatpush3.msra.mxu1 %v416_v44 }
  0x30   : > { %690 = vmatprep.subr.mxu1 %v415_v45 }
  0x31   : > { %691 = vmatpush3.msra.mxu1 %v415_v45 }
  0x32   : > { %692 = vmatprep.subr.mxu1 %v414_v46 }
  0x33   : > { %693 = vmatpush3.msra.mxu1 %v414_v46 }
  0x89   : > { %v260_v26 = vpop.permute.xlu0 %259 }
  0x8a   : > { %v274_v27 = vsel %vm273_vm4, %v244_v25, %v260_v26 }
  0x8c   : > { %v268_v29 = vpop.permute.xlu1 %267 }
  0x8d   : > { %v277_v30 = vsel %vm276_vm5, %v274_v27, %v268_v29  ;;  %v262_v31 = vpop.permute.xlu0 %261 }
  0x8e   : > { %667 = vmatprep.mubr.msk.f32.mxu0 %vm298_vm6, %v277_v30  ;;  %v275_v32 = vsel %vm273_vm4, %v238_v28, %v262_v31 }
  0x90   : > { %v270_v33 = vpop.permute.xlu1 %269 }
  0x91   : > { %v278_v34 = vsel %vm276_vm5, %v275_v32, %v270_v33 }
  0x92   : > { %668 = vmatmul.mubr.msk.f32.vlgmr.msra.gmra.mxu0 %vm298_vm6, %v278_v34 }
 0x152   : > { %v669_v48 = vpop.f32.mrf.mxu0 }
 0x153   : > { %v377_v49 = vadd.f32 %v669_v48, %v603_v47 }
 0x154   : > { %v371_v50 = vpop.f32.mrf.mxu0 }
 0x155   : > { %v381_v51 = vmax.f32 %v377_v49, 0.0  ;;  %v372_v52 = vadd.f32 %v603_v47, %v371_v50 }
 0x157   : > { %v380_v53 = vmax.f32 %v372_v52, 0.0  ;;  %398 = vrot.lane.b32.xlu1 %v381_v51, %s802_s26  ;;  %v383_v54 = vrot.slane %v381_v51, 7  ;;  %v389_v55 = vrot.slane %v381_v51, 1 }
 0x159   : > { %v382_v56 = vrot.slane %v380_v53, 7  ;;  %v388_v57 = vrot.slane %v380_v53, 1  ;;  %396 = vrot.lane.b32.xlu0 %v380_v53, %s802_s26  ;;  %s216_s26 = sand.u32 1, %s792_s19  }
 0x15a   : > { %s1043_s22 = scalar_lea.sflag [#allocation3], %s216_s26 }
 0x15b   : > { %v391_v58 = vsel %vm248_vm0, %v389_v55, %v388_v57  ;;  %v390_v59 = vsel %vm248_vm0, %v388_v57, %v389_v55  ;;  %v384_v60 = vsel %vm237_vm2, %v382_v56, %v383_v54  ;;  %v385_v61 = vsel %vm237_vm2, %v383_v54, %v382_v56 }
 0x15c   : > { %v393_v62 = vsel %vm234_vm1, 0.0, %v391_v58  ;;  %v386_v1 = vsel %vm231_vm3, 0.0, %v385_v61 }
 0x15d   : > { %406 = vrot.lane.b32.xlu1 %v393_v62, %s803_s9  ;;  %404 = vrot.lane.b32.xlu0 %v390_v59, %s803_s9  ;;  %s600_s9 = sshll.u32 %s216_s26, 4 }
 0x15e   : > { %s218_s6 = scalar_lea.vmem [#allocation2], %s600_s9 }
 0x15f   : > { %s534_s7 = sshll.u32 %s218_s6, 4  ;;  %s1039_s7 = int_to_ptr.vmem [resolvable:$true] %s534_s7 }
 0x160   : > { %s740_s12 = scalar_lea.vmem %s1039_s7, 256  ;;  %p747_p0 = scmp.lt.s32.totalorder %s1039_s7, %s745_s14 }
 0x161   : > { %p741_p11 = scmp.ne.s32.totalorder %s1039_s7, %s740_s12  ;;  %p748_p1 = scmp.lt.s32.totalorder %s746_s15, %s740_s12 }
 0x163   : > { %p742_p12 = pnand %p741_p11, %p875_p5  ;;  %p749_p2 = por %p748_p1, %p747_p0 }
 0x165   : > { %p743_p13 = pneg %p742_p12 }
 0x167   : > { %p750_p3 = pnand %p749_p2, %p743_p13 }
 0x1c9   : > { %v399_v63 = vpop.permute.xlu1 %398 }
 0x1ca   : > { %v411_v2 = vsel %vm273_vm4, %v384_v60, %v399_v63 }
 0x1cb   : > { %v397_v0 = vpop.permute.xlu0 %396 }
 0x1cc   : > { %v410_v3 = vsel %vm273_vm4, %v386_v1, %v397_v0 }
 0x1cf   : > { %v407_v5 = vpop.permute.xlu1 %406  ;;  %v405_v7 = vpop.permute.xlu0 %404 }
 0x1d0   : > { %v413_v10 = vsel %vm276_vm5, %v411_v2, %v407_v5  ;;  %v412_v6 = vsel %vm276_vm5, %v410_v3, %v405_v7 }
 0x1d1   : > { %694 = vmatprep.mubr.msk.f32.mxu1 %vm298_vm6, %v412_v6 }
 0x1d2   : > { %695 = vmatmul.mubr.msk.f32.vlgmr.msra.gmra.mxu1 %vm298_vm6, %v413_v10 }
 0x292   : > { %v696_v11 = vpop.f32.mrf.mxu1 }
 0x293   : > { %v511_v12 = vadd.f32 %v696_v11, %v606_v4 }
 0x294   : > { %v505_v13 = vpop.f32.mrf.mxu1 }
 0x295   : > { %v515_v14 = vadd.f32 %v511_v12, %v911_v9  ;;  %v506_v15 = vadd.f32 %v606_v4, %v505_v13 }
 0x297   : > { %v517_v16 = vmax.f32 %v515_v14, 0.0  ;;  %v514_v17 = vadd.f32 %v506_v15, %v909_v8 }
 0x299   : > { %519 = vst.msk [vmem:[%s218_s6 + $0x8] sm:$0xff] %vm273_vm4, %v517_v16  ;;  %v516_v9 = vmax.f32 %v514_v17, 0.0 }
 0x29b   : > { %518 = vst.msk [vmem:[%s218_s6] sm:$0xff] %vm273_vm4, %v516_v9 }
 0x29c   : > { %753 = shalt.err (!%p750_p3)
}
 0x29d   : > { %s754_s16 = scalar_lea.hbm %s1037_s11, 256  ;;  %s758_s9 = scalar_lea.hbm %s1088_s5, 512 }
 0x29e   : > { %p755_p4 = scmp.ne.s32.totalorder %s1037_s11, %s754_s16  ;;  %p759_p9 = scmp.lt.s32.totalorder %s1037_s11, %s1088_s5 }
 0x29f   : > { %p760_p10 = scmp.lt.s32.totalorder %s758_s9, %s754_s16 }
 0x2a0   : > { %p756_p7 = pnand %p755_p4, %p875_p5 }
 0x2a1   : > { %p761_p11 = por %p760_p10, %p759_p9 }
 0x2a2   : > { %p757_p8 = pneg %p756_p7 }
 0x2a4   : > { %p762_p12 = pnand %p761_p11, %p757_p8 }
 0x2a6   : > { %765 = shalt.err (!%p762_p12)
}
 0x2a7   : > { %s805_s30 = smov 128   ;;  %s806_s6 = smov 8  }
 0x2a8   : > { %697 = dma.vmem_to_hbm [thread:$0]  (%p875_p5), %s1039_s7, 256, %s1037_s11, %s1043_s22, %s805_s30, %s805_s30, %s806_s6  }
 0x2a9 PF: > { %p703_p13 = scmp.ge.s32.totalorder %s800_s21, 2  ;;  %s549_s8 = sand.u32 1, %s788_s18  }
 0x2aa   : > { %s550_s10 = scalar_lea.sflag [#allocation3], %s549_s8 }
 0x2ab   : > { %p700_p0 = pnand %p703_p13, %p879_p6 }
 0x2ad   : > { %p701_p1 = pneg %p700_p0 }
 0x2af   : > { %783 = dma.done.wait (%p701_p1), %s550_s10, 256  }
 0x2b0   : > { %785 = vsyncadd (%p701_p1), %s550_s10, 4294967040  ;;  %p15_p2 = scmp.ge.s32.totalorder %s862_s24, 4   ;;  %s1091_s18 = smov %s792_s19 }
 0x2b1   : > { %s1092_s19 = smov %s796_s20  ;;  %s1093_s20 = smov %s873_s27 }
 0x2b2   : > { %s1094_s21 = smov %s862_s24  ;;  %17 = sbr.rel (!%p15_p2) target bundleno = 3 (0x3), region = 75 }
 0x2b7   :  { %555 = vsyncpa [#allocation3], 1 }
 0x2b8   :  { %557 = vsyncpa [#allocation3 + $0x1], 1 }

</bundles_post_ra>
